<compile_context>
chip_gen: v6e
topology: v6e:2x2x1
jax: 0.10.0
libtpu: 0.0.40
codegen_flags: <defaults>
</compile_context>

<pallas_src>
import functools

import jax
import jax.numpy as jnp
from jax.experimental import pallas as pl
from jax.experimental.pallas import tpu as pltpu


def _encoder_kernel(feat_ref, w1_ref, b1_ref, w2_ref, b2_ref, o_ref):
    # feat_ref: (F, Bblk) f32    w1_ref: (F, F) bf16   b1_ref: (F, 1) f32
    # w2_ref:   (C, F) bf16      b2_ref: (C, 1) f32    o_ref:  (C, Bblk) f32
    #
    # Transposed domain: batch stays on the lane (last) axis throughout, so both
    # matmuls are native (out,in) x (in,batch) MXU contractions and the module's
    # 'be->eb' einsum costs nothing (the input already arrives as (F, B)).
    # TODO(synk): nn.Dropout(0.5) is identity in eval mode; training-mode dropout would
    # need pltpu.prng_seed / pltpu.prng_random_bits here and is not implemented.
    feat = feat_ref[...].astype(jnp.bfloat16)                       # (F, Bblk)
    h = jnp.dot(w1_ref[...], feat, preferred_element_type=jnp.float32)   # (F, Bblk) f32
    h = jnp.maximum(h + b1_ref[...], 0.0)                           # f32 epilogue (VPU)
    y = jnp.dot(w2_ref[...], h.astype(jnp.bfloat16),
                preferred_element_type=jnp.float32)                 # (C, Bblk) f32
    y = jnp.maximum(y + b2_ref[...], 0.0)
    o_ref[...] = y.astype(o_ref.dtype)


def _cdiv(a, b):
    return -(-a // b)


def _round_up(x, m):
    return ((x + m - 1) // m) * m


@functools.partial(jax.jit, static_argnames=("max_block_b",))
def features_encoder_forward(features, w1, b1, w2, b2, *, max_block_b=None):
    """features: (features_length, batch) f32 -> (batch, context_size) f32.

    Weights keep the PyTorch nn.Linear (out, in) layout and are stored bf16;
    biases are f32 column vectors (out, 1). Use init_params/pack_params once --
    no per-call layout or cast work happens on this path.
    """
    F, B = features.shape
    C = w2.shape[0]

    # Batch-tile target: ~2 MiB of f32 feature columns per block, multiple of 128,
    # clamped to [128, 2048]. Doubles as the gridless threshold so small/medium
    # batches run as a single VMEM-resident invocation with zero padding.
    tgt = (1 << 21) // (F * 4)
    tgt = max(128, min(2048, (tgt // 128) * 128))
    if max_block_b is not None:
        tgt = max(128, min(tgt, max_block_b))

    if B <= tgt:
        # Gridless path: whole operands live in VMEM, no pipeline machinery, no padding.
        cost = pl.CostEstimate(
            flops=2 * B * F * F + 2 * B * F * C,
            transcendentals=0,
            bytes_accessed=4 * B * F + 2 * F * F + 2 * C * F + 4 * F + 4 * C + 4 * C * B,
        )
        vmem = pl.BlockSpec(memory_space=pltpu.MemorySpace.VMEM)
        out_t = pl.pallas_call(
            _encoder_kernel,
            out_shape=jax.ShapeDtypeStruct((C, B), features.dtype),
            in_specs=[vmem] * 5,
            out_specs=vmem,
            cost_estimate=cost,
        )(features, w1, b1, w2, b2)
        return out_t.T  # (B, C); only C*B*4 bytes, negligible.

    # Grid path: tile the batch (lane) axis with minimal padding.
    nblocks = _cdiv(B, tgt)
    block_b = _round_up(_cdiv(B, nblocks), 128)   # 128-aligned, divides Bp exactly
    Bp = nblocks * block_b
    featp = jnp.pad(features, ((0, 0), (0, Bp - B))) if Bp != B else features

    cost = pl.CostEstimate(
        flops=2 * Bp * F * F + 2 * Bp * F * C,
        transcendentals=0,
        bytes_accessed=4 * Bp * F + 2 * F * F + 2 * C * F + 4 * F + 4 * C + 4 * C * Bp,
    )
    # Per-step VMEM footprint (double-buffered tiles + weights + live f32 intermediate).
    feat_blk = F * block_b * 4
    out_blk = C * block_b * 4
    weights = F * F * 2 + C * F * 2 + F * 4 + C * 4
    footprint = 2 * (feat_blk + out_blk + weights) + feat_blk
    vmem_limit = int(min(48 << 20, max(16 << 20, 2 * footprint)))

    out_t = pl.pallas_call(
        _encoder_kernel,
        out_shape=jax.ShapeDtypeStruct((C, Bp), features.dtype),
        grid_spec=pltpu.PrefetchScalarGridSpec(
            num_scalar_prefetch=0,
            grid=(nblocks,),
            in_specs=[
                pl.BlockSpec((F, block_b), lambda i: (0, i)),
                # Grid-invariant operands (same block every step).
                # TODO(synk): for very large F on v7x (64 MiB VMEM), single-buffer these
                # via pipeline_mode=pl.Buffered(1) and/or shrink block_b further.
                pl.BlockSpec((F, F), lambda i: (0, 0)),
                pl.BlockSpec((F, 1), lambda i: (0, 0)),
                pl.BlockSpec((C, F), lambda i: (0, 0)),
                pl.BlockSpec((C, 1), lambda i: (0, 0)),
            ],
            out_specs=pl.BlockSpec((C, block_b), lambda i: (0, i)),
        ),
        compiler_params=pltpu.CompilerParams(
            # Batch tiles are independent: megacore / v7x's two TensorCores split them.
            dimension_semantics=("parallel",),
            vmem_limit_bytes=vmem_limit,
        ),
        cost_estimate=cost,
    )(featp, w1, b1, w2, b2)
    return out_t[:, :B].T  # (B, C); tiny slice+transpose of a C-row strip.


def pack_params(w1, b1, w2, b2):
    """One-time layout/cast work, hoisted out of the forward path.

    Inputs in PyTorch layout: w1 (F, F), b1 (F,), w2 (C, F), b2 (C,).
    Returns bf16 weights (unchanged (out, in) layout) and f32 column-vector biases.
    """
    return (w1.astype(jnp.bfloat16), b1.reshape(-1, 1).astype(jnp.float32),
            w2.astype(jnp.bfloat16), b2.reshape(-1, 1).astype(jnp.float32))


def init_params(key, features_length, context_size):
    """nn.Linear default init (uniform +/- 1/sqrt(fan_in)), packed for the kernel."""
    k1, k2, k3, k4 = jax.random.split(key, 4)
    bound = 1.0 / jnp.sqrt(features_length)
    w1 = jax.random.uniform(k1, (features_length, features_length),
                            jnp.float32, -bound, bound)
    b1 = jax.random.uniform(k2, (features_length,), jnp.float32, -bound, bound)
    w2 = jax.random.uniform(k3, (context_size, features_length),
                            jnp.float32, -bound, bound)
    b2 = jax.random.uniform(k4, (context_size,), jnp.float32, -bound, bound)
    return pack_params(w1, b1, w2, b2)


if __name__ == "__main__":
    features_length = 32   # F
    batch = 8              # B
    context_size = 16      # C

    key = jax.random.PRNGKey(0)
    k_feat, k_param, k_big = jax.random.split(key, 3)

    # Input as the PyTorch module expects before its 'be->eb' transpose: (F, B).
    features = jax.random.normal(k_feat, (features_length, batch), jnp.float32)
    w1, b1, w2, b2 = init_params(k_param, features_length, context_size)

    # Reference uses the same (bf16-stored) weights in f32 math, matching the
    # PyTorch forward in eval mode; only activation rounding differs from the kernel.
    def ref_fn(feat):
        x = feat.T
        h = jnp.maximum(x @ w1.astype(jnp.float32).T + b1.reshape(-1), 0.0)
        return jnp.maximum(h @ w2.astype(jnp.float32).T + b2.reshape(-1), 0.0)

    # Small batch: gridless, everything VMEM-resident, no padding.
    out = jax.block_until_ready(features_encoder_forward(features, w1, b1, w2, b2))
    assert out.shape == (batch, context_size)
    assert jnp.allclose(out, ref_fn(features), atol=3e-2, rtol=3e-2)

    # Medium batch, default config: still gridless (B <= tile target), zero padding.
    big_batch = 700
    features_big = jax.random.normal(k_big, (features_length, big_batch), jnp.float32)
    out_big = jax.block_until_ready(
        features_encoder_forward(features_big, w1, b1, w2, b2))
    assert out_big.shape == (big_batch, context_size)
    assert jnp.allclose(out_big, ref_fn(features_big), atol=3e-2, rtol=3e-2)

    # Force the batch-tiled "parallel" grid path (3 blocks of 256, B padded 700 -> 768).
    out_grid = jax.block_until_ready(
        features_encoder_forward(features_big, w1, b1, w2, b2, max_block_b=256))
    assert out_grid.shape == (big_batch, context_size)
    assert jnp.allclose(out_grid, ref_fn(features_big), atol=3e-2, rtol=3e-2)

    print("KERNEL_OK")
</pallas_src>

<mosaic_0001>
module attributes {stable_mosaic.version = 11 : i64} {
  func.func @_encoder_kernel(%arg0: memref<32x8xf32, #tpu.memory_space<vmem>>, %arg1: memref<32x32xbf16, #tpu.memory_space<vmem>>, %arg2: memref<32x1xf32, #tpu.memory_space<vmem>>, %arg3: memref<16x32xbf16, #tpu.memory_space<vmem>>, %arg4: memref<16x1xf32, #tpu.memory_space<vmem>>, %arg5: memref<16x8xf32, #tpu.memory_space<vmem>>) attributes {dimension_semantics = [], scalar_prefetch = 0 : i64, scratch_operands = 0 : i64, tpu.core_type = #tpu.core_type<tc>} {
    %c0 = arith.constant 0 : index
    %c0_0 = arith.constant 0 : index
    %0 = vector.load %arg0[%c0, %c0_0] : memref<32x8xf32, #tpu.memory_space<vmem>>, vector<32x8xf32>
    %1 = arith.truncf %0 : vector<32x8xf32> to vector<32x8xbf16>
    %c0_1 = arith.constant 0 : index
    %c0_2 = arith.constant 0 : index
    %2 = vector.load %arg1[%c0_1, %c0_2] : memref<32x32xbf16, #tpu.memory_space<vmem>>, vector<32x32xbf16>
    %cst = arith.constant dense<0.000000e+00> : vector<32x8xf32>
    %3 = tpu.matmul %2, %1, %cst {dimension_numbers = #tpu.dot_dimension_numbers<[1], [0], [0], [1], [0, 0, 1, 1], [], []>} : vector<32x32xbf16>, vector<32x8xbf16>, vector<32x8xf32> -> vector<32x8xf32>
    %c0_3 = arith.constant 0 : index
    %c0_4 = arith.constant 0 : index
    %4 = vector.load %arg2[%c0_3, %c0_4] : memref<32x1xf32, #tpu.memory_space<vmem>>, vector<32x1xf32>
    %5 = vector.broadcast %4 : vector<32x1xf32> to vector<32x8xf32>
    %6 = arith.addf %3, %5 : vector<32x8xf32>
    %cst_5 = arith.constant 0.000000e+00 : f32
    %7 = vector.broadcast %cst_5 : f32 to vector<32x8xf32>
    %8 = arith.maximumf %6, %7 : vector<32x8xf32>
    %c0_6 = arith.constant 0 : index
    %c0_7 = arith.constant 0 : index
    %9 = vector.load %arg3[%c0_6, %c0_7] : memref<16x32xbf16, #tpu.memory_space<vmem>>, vector<16x32xbf16>
    %10 = arith.truncf %8 : vector<32x8xf32> to vector<32x8xbf16>
    %cst_8 = arith.constant dense<0.000000e+00> : vector<16x8xf32>
    %11 = tpu.matmul %9, %10, %cst_8 {dimension_numbers = #tpu.dot_dimension_numbers<[1], [0], [0], [1], [0, 0, 1, 1], [], []>} : vector<16x32xbf16>, vector<32x8xbf16>, vector<16x8xf32> -> vector<16x8xf32>
    %c0_9 = arith.constant 0 : index
    %c0_10 = arith.constant 0 : index
    %12 = vector.load %arg4[%c0_9, %c0_10] : memref<16x1xf32, #tpu.memory_space<vmem>>, vector<16x1xf32>
    %13 = vector.broadcast %12 : vector<16x1xf32> to vector<16x8xf32>
    %14 = arith.addf %11, %13 : vector<16x8xf32>
    %cst_11 = arith.constant 0.000000e+00 : f32
    %15 = vector.broadcast %cst_11 : f32 to vector<16x8xf32>
    %16 = arith.maximumf %14, %15 : vector<16x8xf32>
    %c0_12 = arith.constant 0 : index
    %c0_13 = arith.constant 0 : index
    %17 = vector.load %arg5[%c0_12, %c0_13] : memref<16x8xf32, #tpu.memory_space<vmem>>, vector<16x8xf32>
    tpu.vector_store %arg5[%c0_12, %c0_13], %16 {strides = array<i32>} : memref<16x8xf32, #tpu.memory_space<vmem>>, vector<16x8xf32>,
    return
  }
}

</mosaic_0001>

<bundles_post_ra>
// kernel: features_encoder_forward.1
= control target key start
LH: loop header
LB: loop body
LE: loop exit
PB: predicated region body
PF: predicated region fallthrough
CT: control target
= control target key end

     0   :  { %v236_v3 = vmov 0   ;;  %vm65_vm0 = vcmask 261120   ;;  %v237_v15 = vmov 0.0   ;;  %vm238_vm1 = vmmov 0   ;;  %s317_s0 = inlined_call_operand.vmem [shape: f32[32,8], index: 0, kind: input, shape index: {}]   ;;  %s318_s1 = inlined_call_operand.vmem [shape: bf16[32,32], index: 1, kind: input, shape index: {}]   ;;  %s319_s2 = inlined_call_operand.vmem [shape: f32[32,1], index: 2, kind: input, shape index: {}]   ;;  %s320_s4 = inlined_call_operand.vmem [shape: f32[16,1], index: 4, kind: input, shape index: {}]   ;;  %s321_s3 = inlined_call_operand.vmem [shape: bf16[16,32], index: 3, kind: input, shape index: {}]   ;;  %s322_s5 = inlined_call_operand.vmem [shape: f32[16,8], index: 5, kind: output, shape index: {}]  }
   0x1   :  { %v23_v0 = vld [vmem:[%s317_s0 + $0x10] sm:$0xff]  ;;  %v24_v1 = vld [vmem:[%s317_s0 + $0x18] sm:$0xff]  ;;  %v21_v2 = vld [vmem:[%s317_s0] sm:$0xff]  ;;  %231 = vset.pattern.permute.xlu0 %v236_v3  ;;  %232 = vset.pattern.permute.xlu1 %v236_v3  ;;  %vm192_vm2 = vcmask 64512  }
   0x2   :  { %v26_v4 = vpack.c.bf16 %v24_v1, %v23_v0  ;;  %v22_v5 = vld [vmem:[%s317_s0 + $0x8] sm:$0xff]  ;;  %v233_v7 = vld [vmem:[%s318_s1] sm:$0xff]   ;;  %v33_v8 = vld [vmem:[%s319_s2 + $0x10] sm:$0xff]  ;;  %220 = vmatprep.subr.bf16.mxu1 %v237_v15  ;;  %224 = vmatprep.mubr.msk.bf16.mxu1 %vm238_vm1, %v237_v15 }
   0x3   :  { %v25_v6 = vpack.c.bf16 %v22_v5, %v21_v2  ;;  %216 = vmatprep.mubr.msk.bf16.mxu0 %vm65_vm0, %v233_v7  ;;  %v31_v9 = vld [vmem:[%s319_s2] sm:$0xff]  ;;  %47 = vperm.xlu0 %231, %v33_v8   ;;  %v34_v10 = vld [vmem:[%s319_s2 + $0x18] sm:$0xff]  ;;  %v234_v11 = vld [vmem:[%s318_s1 + $0x8] sm:$0xff]  }
   0x4   :  { %212 = vmatprep.subr.bf16.mxu0 %v26_v4  ;;  %37 = vperm.xlu1 %232, %v31_v9   ;;  %v32_v12 = vld [vmem:[%s319_s2 + $0x8] sm:$0xff]  ;;  %v129_v13 = vld [vmem:[%s320_s4] sm:$0xff] }
   0x5   :  { %213 = vmatpush3.bf16.msra.mxu0 %v26_v4  ;;  %v130_v14 = vld [vmem:[%s320_s4 + $0x8] sm:$0xff]  ;;  %v235_v34 = vld [vmem:[%s321_s3] sm:$0xff]  }
   0x6   :  { %214 = vmatprep.subr.bf16.mxu0 %v25_v6 }
   0x7   :  { %52 = vperm.xlu0 %231, %v34_v10  }
   0x8   :  { %42 = vperm.xlu1 %232, %v32_v12  }
   0x9   :  { %215 = vmatpush3.bf16.msra.mxu0 %v25_v6 }
   0xb   :  { %133 = vperm.xlu0 %231, %v129_v13  }
   0xc   :  { %217 = vmatmul.mubr.msk.bf16.vlgmr.msra.gmra.mxu0 %vm65_vm0, %v234_v11  ;;  %138 = vperm.xlu1 %232, %v130_v14  }
  0x7e   :  { %v48_v16 = vpop.permute.xlu0 %47 }
  0x7f   :  { %v38_v17 = vpop.permute.xlu1 %37 }
  0x82   :  { %v53_v21 = vpop.permute.xlu0 %52 }
  0x83   :  { %v43_v24 = vpop.permute.xlu1 %42 }
  0x86   :  { %v134_v35 = vpop.permute.xlu0 %133 }
  0x87   :  { %v139_v40 = vpop.permute.xlu1 %138 }
  0xcc   :  { %v218_v18 = vpop.f32.mrf.mxu0 }
  0xcd   :  { %v115_v20 = vadd.f32 %v218_v18, %v48_v16 }
  0xce   :  { %v106_v19 = vpop.f32.mrf.mxu0 }
  0xcf   :  { %v123_v26 = vmax.f32 %v115_v20, 0.0  ;;  %v107_v27 = vadd.f32 %v106_v19, %v38_v17 }
  0xd0   :  { %v219_v22 = vpop.f32.mrf.mxu0 }
  0xd1   :  { %v118_v23 = vadd.f32 %v219_v22, %v53_v21  ;;  %v121_v32 = vmax.f32 %v107_v27, 0.0 }
  0xd2   :  { %v109_v25 = vpop.f32.mrf.mxu0 }
  0xd3   :  { %v124_v28 = vmax.f32 %v118_v23, 0.0  ;;  %v110_v29 = vadd.f32 %v109_v25, %v43_v24 }
  0xd5   :  { %v122_v30 = vmax.f32 %v110_v29, 0.0  ;;  %v128_v31 = vpack.c.bf16 %v124_v28, %v123_v26 }
  0xd7   :  { %221 = vmatpush3.bf16.msra.mxu1 %v128_v31  ;;  %v127_v33 = vpack.c.bf16 %v122_v30, %v121_v32 }
  0xd8   :  { %222 = vmatprep.subr.bf16.mxu1 %v237_v15 }
  0xdb   :  { %223 = vmatpush3.bf16.msra.mxu1 %v127_v33 }
  0xde   :  { %225 = vmatmul.mubr.msk.bf16.vlgmr.msra.gmra.mxu1 %vm65_vm0, %v235_v34 }
 0x19e   :  { %v183_v36 = vpop.f32.mrf.mxu1 }
 0x19f   :  { %v184_v37 = vadd.f32 %v183_v36, %v134_v35 }
 0x1a0   :  { %v226_v38 = vpop.f32.mrf.mxu1 }
 0x1a1   :  { %v190_v39 = vmax.f32 %v184_v37, 0.0 }
 0x1a2   :  { %v186_v41 = vpop.f32.mrf.mxu1 }
 0x1a3   :  { %193 = vst.msk [vmem:[%s322_s5] sm:$0xff] %vm192_vm2, %v190_v39  ;;  %v187_v42 = vadd.f32 %v186_v41, %v139_v40 }
 0x1a4   :  { %v227_v43 = vpop.f32.mrf.mxu1 }
 0x1a5   :  { %v191_v44 = vmax.f32 %v187_v42, 0.0 }
 0x1a7   :  { %194 = vst.msk [vmem:[%s322_s5 + $0x8] sm:$0xff] %vm192_vm2, %v191_v44 }

</bundles_post_ra>
